<compile_context>
chip_gen: v5e
topology: v5e:2x2
jax: 0.10.0
libtpu: 0.0.40
codegen_flags: <defaults>
</compile_context>

<pallas_src>
import jax
import jax.numpy as jnp
from jax.experimental import pallas as pl
from jax.experimental.pallas import tpu as pltpu

Layers = [1, 16, 16]
TB = 128  # batch tile on the lane axis; multiple of 128 => lane-dense tiles


def mlp_kernel(x_ref, w1_ref, b1_ref, w2_ref, b2_ref, o_ref):
    # Lane-major layout (batch on lanes):
    #   x:  (d_in, TB)       w1: (d_hid, d_in=1)   b1: (d_hid, 1)
    #   w2: (d_out, d_hid)   b2: (d_out, 1)        o:  (d_out, TB)
    x = x_ref[...]                                          # (1, TB)
    # Layer 1: K=1 contraction -> VPU broadcast multiply (no MXU pass needed).
    h = jnp.maximum(w1_ref[...] * x + b1_ref[...], 0.0)     # (d_hid, TB)
    # Layer 2: MXU matmul with lane-dense N=TB; PyTorch (out,in) weight as-is.
    y = jnp.dot(w2_ref[...], h,
                preferred_element_type=jnp.float32) + b2_ref[...]
    o_ref[...] = y.astype(o_ref.dtype)


def net_forward(x, params):
    """x: (B, Layers[0]) float32 -> (B, Layers[-1]) float32 (same as torch Net)."""
    (w1, b1), (w2, b2) = params          # PyTorch layout: w (out, in), b (out,)
    B = x.shape[0]
    d_in, d_hid, d_out = w1.shape[1], w1.shape[0], w2.shape[0]

    # Pad batch to a multiple of TB and go lane-major (features on sublanes,
    # batch on lanes).
    Bp = ((B + TB - 1) // TB) * TB
    x_t = jnp.zeros((d_in, Bp), jnp.float32).at[:, :B].set(x.T)
    b1c = b1.reshape(d_hid, 1)
    b2c = b2.reshape(d_out, 1)

    grid = (Bp // TB,)
    flops = 2 * Bp * (d_in * d_hid + d_hid * d_out)
    bytes_accessed = 4 * (Bp * d_in + Bp * d_out
                          + d_hid * d_in + d_hid + d_out * d_hid + d_out)

    out_t = pl.pallas_call(
        mlp_kernel,
        out_shape=jax.ShapeDtypeStruct((d_out, Bp), jnp.float32),
        grid_spec=pltpu.PrefetchScalarGridSpec(
            num_scalar_prefetch=0,
            grid=grid,
            in_specs=[
                pl.BlockSpec((d_in, TB), lambda i: (0, i)),      # x (batch-tiled)
                pl.BlockSpec((d_hid, d_in), lambda i: (0, 0)),   # w1 (resident)
                pl.BlockSpec((d_hid, 1), lambda i: (0, 0)),      # b1 (resident)
                pl.BlockSpec((d_out, d_hid), lambda i: (0, 0)),  # w2 (resident)
                pl.BlockSpec((d_out, 1), lambda i: (0, 0)),      # b2 (resident)
            ],
            out_specs=pl.BlockSpec((d_out, TB), lambda i: (0, i)),
        ),
        compiler_params=pltpu.CompilerParams(
            # batch tiles are independent -> pipelined and (on v7x) split
            # across both TensorCores.  Tiles are tiny (~8 KiB), so the
            # default scoped-VMEM limit is plenty on v5e/v6e/v7x.
            dimension_semantics=("parallel",),
        ),
        cost_estimate=pl.CostEstimate(
            flops=flops, transcendentals=0, bytes_accessed=bytes_accessed),
    )(x_t, w1, b1c, w2, b2c)

    return out_t[:, :B].T                 # back to (B, d_out)


def init_params(key, layers):
    """Deterministic init mimicking nn.Linear default U(-1/sqrt(fan_in), +)."""
    params = []
    for fan_in, fan_out in zip(layers, layers[1:]):
        key, kw, kb = jax.random.split(key, 3)
        bound = 1.0 / jnp.sqrt(jnp.float32(fan_in))
        # stored PyTorch-style as (out, in); used as-is by the lane-major kernel
        w = jax.random.uniform(kw, (fan_out, fan_in), jnp.float32, -bound, bound)
        b = jax.random.uniform(kb, (fan_out,), jnp.float32, -bound, bound)
        params.append((w, b))
    return params


if __name__ == "__main__":
    key = jax.random.PRNGKey(0)
    key, kx = jax.random.split(key)

    B = 256  # two 128-wide batch tiles -> grid=(2,): exercises pipelining / 2 TCs
    x = jax.random.normal(kx, (B, Layers[0]), jnp.float32)

    params = init_params(key, Layers)
    out = net_forward(x, params)
    jax.block_until_ready(out)

    # reference check in plain JAX (same semantics as the torch forward)
    (w1, b1), (w2, b2) = params
    ref = jnp.maximum(x @ w1.T + b1, 0.0) @ w2.T + b2
    assert out.shape == (B, Layers[-1])
    assert jnp.allclose(out, ref, atol=1e-5, rtol=1e-5)

    print("KERNEL_OK")
</pallas_src>

<mosaic_0001>
module attributes {stable_mosaic.version = 11 : i64} {
  func.func @mlp_kernel(%arg0: i32, %arg1: memref<1x128xf32, #tpu.memory_space<vmem>>, %arg2: memref<16x1xf32, #tpu.memory_space<vmem>>, %arg3: memref<16x1xf32, #tpu.memory_space<vmem>>, %arg4: memref<16x16xf32, #tpu.memory_space<vmem>>, %arg5: memref<16x1xf32, #tpu.memory_space<vmem>>, %arg6: memref<16x128xf32, #tpu.memory_space<vmem>>) attributes {dimension_semantics = [#tpu.dimension_semantics<parallel>], iteration_bounds = array<i64: 2>, scalar_prefetch = 0 : i64, scratch_operands = 0 : i64, tpu.core_type = #tpu.core_type<tc>, window_params = [{transform_indices = @transform_0, window_bounds = array<i64: 1, 128>}, {pipeline_mode = #tpu.pipeline_mode<synchronous>, transform_indices = @transform_1, window_bounds = array<i64: 16, 1>}, {pipeline_mode = #tpu.pipeline_mode<synchronous>, transform_indices = @transform_2, window_bounds = array<i64: 16, 1>}, {pipeline_mode = #tpu.pipeline_mode<synchronous>, transform_indices = @transform_3, window_bounds = array<i64: 16, 16>}, {pipeline_mode = #tpu.pipeline_mode<synchronous>, transform_indices = @transform_4, window_bounds = array<i64: 16, 1>}, {transform_indices = @transform_5, window_bounds = array<i64: 16, 128>}]} {
    %c0 = arith.constant 0 : index
    %c0_0 = arith.constant 0 : index
    %0 = vector.load %arg1[%c0, %c0_0] : memref<1x128xf32, #tpu.memory_space<vmem>>, vector<1x128xf32>
    %c0_1 = arith.constant 0 : index
    %c0_2 = arith.constant 0 : index
    %1 = vector.load %arg2[%c0_1, %c0_2] : memref<16x1xf32, #tpu.memory_space<vmem>>, vector<16x1xf32>
    %2 = vector.broadcast %1 : vector<16x1xf32> to vector<16x128xf32>
    %3 = vector.broadcast %0 : vector<1x128xf32> to vector<16x128xf32>
    %4 = arith.mulf %2, %3 : vector<16x128xf32>
    %c0_3 = arith.constant 0 : index
    %c0_4 = arith.constant 0 : index
    %5 = vector.load %arg3[%c0_3, %c0_4] : memref<16x1xf32, #tpu.memory_space<vmem>>, vector<16x1xf32>
    %6 = vector.broadcast %5 : vector<16x1xf32> to vector<16x128xf32>
    %7 = arith.addf %4, %6 : vector<16x128xf32>
    %cst = arith.constant 0.000000e+00 : f32
    %8 = vector.broadcast %cst : f32 to vector<16x128xf32>
    %9 = arith.maximumf %7, %8 : vector<16x128xf32>
    %c0_5 = arith.constant 0 : index
    %c0_6 = arith.constant 0 : index
    %10 = vector.load %arg4[%c0_5, %c0_6] : memref<16x16xf32, #tpu.memory_space<vmem>>, vector<16x16xf32>
    %cst_7 = arith.constant dense<0.000000e+00> : vector<16x128xf32>
    %11 = tpu.matmul %10, %9, %cst_7 {dimension_numbers = #tpu.dot_dimension_numbers<[1], [0], [0], [1], [0, 0, 1, 1], [], []>} : vector<16x16xf32>, vector<16x128xf32>, vector<16x128xf32> -> vector<16x128xf32>
    %c0_8 = arith.constant 0 : index
    %c0_9 = arith.constant 0 : index
    %12 = vector.load %arg5[%c0_8, %c0_9] : memref<16x1xf32, #tpu.memory_space<vmem>>, vector<16x1xf32>
    %13 = vector.broadcast %12 : vector<16x1xf32> to vector<16x128xf32>
    %14 = arith.addf %11, %13 : vector<16x128xf32>
    %c0_10 = arith.constant 0 : index
    %c0_11 = arith.constant 0 : index
    %15 = vector.load %arg6[%c0_10, %c0_11] : memref<16x128xf32, #tpu.memory_space<vmem>>, vector<16x128xf32>
    tpu.vector_store %arg6[%c0_10, %c0_11], %14 {strides = array<i32>} : memref<16x128xf32, #tpu.memory_space<vmem>>, vector<16x128xf32>,
    return
  }
  func.func @transform_0(%arg0: i32) -> (i32, i32) {
    %c0_i32 = arith.constant 0 : i32
    %c0_i32_0 = arith.constant 0 : i32
    return %c0_i32, %arg0 : i32, i32
  }
  func.func @transform_1(%arg0: i32) -> (i32, i32) {
    %c0_i32 = arith.constant 0 : i32
    %c0_i32_0 = arith.constant 0 : i32
    %c0_i32_1 = arith.constant 0 : i32
    return %c0_i32, %c0_i32_0 : i32, i32
  }
  func.func @transform_2(%arg0: i32) -> (i32, i32) {
    %c0_i32 = arith.constant 0 : i32
    %c0_i32_0 = arith.constant 0 : i32
    %c0_i32_1 = arith.constant 0 : i32
    return %c0_i32, %c0_i32_0 : i32, i32
  }
  func.func @transform_3(%arg0: i32) -> (i32, i32) {
    %c0_i32 = arith.constant 0 : i32
    %c0_i32_0 = arith.constant 0 : i32
    %c0_i32_1 = arith.constant 0 : i32
    return %c0_i32, %c0_i32_0 : i32, i32
  }
  func.func @transform_4(%arg0: i32) -> (i32, i32) {
    %c0_i32 = arith.constant 0 : i32
    %c0_i32_0 = arith.constant 0 : i32
    %c0_i32_1 = arith.constant 0 : i32
    return %c0_i32, %c0_i32_0 : i32, i32
  }
  func.func @transform_5(%arg0: i32) -> (i32, i32) {
    %c0_i32 = arith.constant 0 : i32
    %c0_i32_0 = arith.constant 0 : i32
    return %c0_i32, %arg0 : i32, i32
  }
}

</mosaic_0001>

<bundles_post_ra>
// kernel: tpu_custom_call.1
= control target key start
LH: loop header
LB: loop body
LE: loop exit
PB: predicated region body
PF: predicated region fallthrough
CT: control target
= control target key end

     0   :  { %10 = vsyncpa [#allocation3], 0  ;;  %s638_s0 = inlined_call_operand.vmem [shape: f32[1,256], index: 0, kind: input, shape index: {}]   ;;  %s639_s1 = inlined_call_operand.vmem [shape: f32[16,1], index: 1, kind: input, shape index: {}]   ;;  %s640_s2 = inlined_call_operand.vmem [shape: f32[16,1], index: 2, kind: input, shape index: {}]   ;;  %s641_s3 = inlined_call_operand.vmem [shape: f32[16,16], index: 3, kind: input, shape index: {}]   ;;  %s642_s4 = inlined_call_operand.vmem [shape: f32[16,1], index: 4, kind: input, shape index: {}]   ;;  %s643_s5 = inlined_call_operand.hbm [shape: f32[16,256], index: 5, kind: output, shape index: {}]  }
   0x1   :  { %12 = vsyncpa [#allocation3 + $0x1], 0  ;;  %s529_s18 = smov 0   ;;  %s531_s19 = smov 0  }
   0x2   :  { %s533_s20 = smov 0   ;;  %s535_s21 = smov 0  }
   0x3 LB: > { %s550_s22 = sadd.s32 4294967295, %s493_s21   ;;  %s371_s23 = sadd.s32 4294967294, %s493_s21   ;;  %s493_s21 = sphi %s535_s21, %s649_s21   ;;  %s489_s20 = sphi %s533_s20, %s648_s20   ;;  %s485_s19 = sphi %s531_s19, %s647_s19   ;;  %s481_s18 = sphi %s529_s18, %s646_s18  }
   0x4   : > { %s554_s24 = sadd.s32 1, %s493_s21   ;;  %s135_s25 = sadd.s32 1, %s489_s20 }
   0x5   : > { %s132_s26 = ssub.s32 %s493_s21, %s554_s24  ;;  %p145_p0 = scmp.ne.s32.totalorder %s489_s20, %s485_s19 }
   0x6   : > { %p133_p1 = scmp.eq.s32.totalorder %s132_s26, 0  ;;  %p146_p2 = scmp.eq.s32.totalorder %s550_s22, 1 }
   0x7   : > { %p151_p3 = scmp.ne.s32.totalorder %s485_s19, %s481_s18  ;;  %p152_p4 = scmp.eq.s32.totalorder %s371_s23, 1 }
   0x8   : > { %s565_s27 = scalar_select %p133_p1, %s489_s20, %s135_s25  }
   0x9   : > { %p567_p5 = por %p146_p2, %p145_p0  ;;  %p571_p6 = por %p152_p4, %p151_p3 }
   0xa   : > { %p374_p7 = scmp.ge.s32.totalorder %s493_s21, 1  ;;  %p188_p8 = scmp.lt.s32.totalorder %s493_s21, 3 }
   0xc   : > { %p189_p9 = pnand %p374_p7, %p188_p8 }
   0xd   : > { %p214_p10 = scmp.lt.s32.totalorder (!%p189_p9), %s550_s22, 1  ;;  %s379_s11 = sshll.u32 (!%p189_p9), %s550_s22, 3 }
   0xe   : > { %192 = sbr.rel (%p189_p9) target bundleno = 285 (0x11d), region = 40  ;;  %s308_s14 = scalar_lea.hbm (!%p189_p9), %s643_s5, %s379_s11 }
   0xf   : > { %s311_s17 = sshll.u32 (!%p189_p9), %s308_s14, 4  ;;  %s451_s6 = scalar_lea.hbm (!%p189_p9), %s643_s5, 32  ;;  %s312_s17 = int_to_ptr.hbm [resolvable:$true] %s311_s17 }
  0x10   : > { %s445_s25 = sshra.s32 (!%p189_p9), %s312_s17, 4  ;;  %s446_s25 = int_to_ptr.hbm [resolvable:$true] %s445_s25 }
  0x11   : > { %p452_p0 = scmp.lt.s32.totalorder (!%p189_p9), %s446_s25, %s643_s5 }
  0x13   : > { %v236_v0 = vld [vmem:[%s640_s2 + $0x8] sm:$0xff]  ;;  %v495_v2 = vmov 0   ;;  %s215_s9 = scalar_select %p214_p10, %s550_s22, 1  ;;  %v235_v3 = vld [vmem:[%s640_s2] sm:$0xff]  ;;  %vm265_vm0 = vcmask 130048  }
  0x14   : > { %v219_v1 = vld [vmem:[%s639_s1 + $0x8] sm:$0xff]  ;;  %428 = vset.pattern.permute.xlu1 %v495_v2  ;;  %427 = vset.pattern.permute.xlu0 %v495_v2  ;;  %v218_v4 = vld [vmem:[%s639_s1] sm:$0xff]  ;;  %s447_s22 = scalar_lea.hbm %s446_s25, 16 }
  0x15   : > { %244 = vperm.xlu1 %428, %v236_v0   ;;  %227 = vperm.xlu0 %427, %v219_v1   ;;  %s216_s12 = scalar_lea.vmem %s638_s0, %s215_s9  ;;  %v253_v5 = vld [vmem:[%s642_s4] sm:$0xff]  ;;  %v254_v6 = vld [vmem:[%s642_s4 + $0x8] sm:$0xff]  ;;  %s211_s9 = sand.u32 1, %s485_s19  }
  0x16   : > { %429 = vset.pattern.permute.xlu2 %v495_v2  ;;  %v430_v7 = vld [vmem:[%s216_s12] ss:$0 sm:$0xff]  ;;  %v252_v19 = vld [vmem:[%s641_s3 + $0x8] sm:$0xff]  ;;  %s375_s10 = sshll.u32 %s211_s9, 4  ;;  %s298_s23 = scalar_lea.sflag [#allocation3], %s211_s9 }
  0x17   : > { %257 = vperm.xlu2 %429, %v253_v5   ;;  %v251_v18 = vld [vmem:[%s641_s3] sm:$0xff]  ;;  %s213_s15 = scalar_lea.vmem [#allocation2], %s375_s10  ;;  %p448_p11 = scmp.ne.s32.totalorder %s446_s25, %s447_s22 }
  0x18   : > { %s309_s16 = sshll.u32 %s213_s15, 4  ;;  %p453_p1 = scmp.lt.s32.totalorder %s451_s6, %s447_s22  ;;  %s310_s16 = int_to_ptr.vmem [resolvable:$true] %s309_s16 }
  0x19   : > { %p449_p12 = pnand %p448_p11, %p567_p5 }
  0x1a   : > { %p454_p2 = por %p453_p1, %p452_p0 }
  0x1b   : > { %p450_p13 = pneg %p449_p12 }
  0x1d   : > { %239 = vperm.xlu1 %428, %v235_v3   ;;  %222 = vperm.xlu0 %427, %v218_v4   ;;  %p455_p3 = pnand %p454_p2, %p450_p13 }
  0x1f   : > { %262 = vperm.xlu2 %429, %v254_v6  }
  0x71   : > { %v258_v20 = vpop.permute.xlu2 %257 }
  0x79   : > { %v263_v21 = vpop.permute.xlu2 %262 }
  0x87   : > { %v245_v8 = vpop.permute.xlu1 %244  ;;  %v228_v9 = vpop.permute.xlu0 %227 }
  0x88   : > { %v234_v10 = vmul.f32 %v430_v7, %v228_v9 }
  0x8a   : > { %v248_v11 = vadd.f32 %v245_v8, %v234_v10 }
  0x8c   : > { %v250_v12 = vmax.f32 %v248_v11, 0.0 }
  0x8e   : > { %286 = vmatpush.msra.mxu0 %v250_v12  ;;  %382 = vmatpush.msra.mxu1 %v250_v12 }
  0x8f   : > { %v223_v13 = vpop.permute.xlu0 %222  ;;  %v240_v15 = vpop.permute.xlu1 %239 }
  0x90   : > { %v233_v14 = vmul.f32 %v430_v7, %v223_v13 }
  0x92   : > { %v247_v16 = vadd.f32 %v240_v15, %v233_v14 }
  0x94   : > { %v249_v17 = vmax.f32 %v247_v16, 0.0 }
  0x96   : > { %287 = vmatpush.msra.mxu0 %v249_v17  ;;  %383 = vmatpush.msra.mxu1 %v249_v17 }
  0x97   : > { %376 = vmatmul.msk.f32.vlgmr.msra.gmra.mxu0 %vm265_vm0, %v251_v18  ;;  %377 = vmatmul.msk.f32.vlgmr.msra.gmra.mxu1 %vm265_vm0, %v252_v19 }
 0x114   : > { %v289_v22 = vpop.f32.mrf.mxu0  ;;  %v292_v23 = vpop.f32.mrf.mxu1 }
 0x115   : > { %v290_v24 = vadd.f32 %v289_v22, %v258_v20  ;;  %v293_v25 = vadd.f32 %v292_v23, %v263_v21 }
 0x117   : > { %295 = vst [vmem:[%s213_s15] sm:$0xff] %v290_v24 }
 0x118   : > { %296 = vst [vmem:[%s213_s15 + $0x8] sm:$0xff] %v293_v25 }
 0x119   : > { %458 = shalt.err (!%p455_p3)
}
 0x11a   : > { %s496_s9 = smov 128   ;;  %s497_s10 = smov 256  }
 0x11b   : > { %s498_s11 = smov 8  }
 0x11c   : > { %384 = dma.vmem_to_hbm [thread:$0]  (%p567_p5), %s310_s16, 256, %s312_s17, %s298_s23, %s496_s9, %s497_s10, %s498_s11  }
 0x11d PF: > { %p390_p4 = scmp.ge.s32.totalorder %s493_s21, 2  ;;  %s326_s12 = sand.u32 1, %s481_s18  }
 0x11e   : > { %s327_s13 = scalar_lea.sflag [#allocation3], %s326_s12 }
 0x11f   : > { %p387_p7 = pnand %p390_p4, %p571_p6 }
 0x121   : > { %p388_p8 = pneg %p387_p7 }
 0x123   : > { %476 = dma.done.wait (%p388_p8), %s327_s13, 256  }
 0x124   : > { %478 = vsyncadd (%p388_p8), %s327_s13, 4294967040  ;;  %p15_p9 = scmp.ge.s32.totalorder %s554_s24, 4   ;;  %s646_s18 = smov %s485_s19 }
 0x125   : > { %s647_s19 = smov %s489_s20  ;;  %s648_s20 = smov %s565_s27 }
 0x126   : > { %s649_s21 = smov %s554_s24  ;;  %17 = sbr.rel (!%p15_p9) target bundleno = 3 (0x3), region = 75 }
 0x12b   :  { %333 = vsyncpa [#allocation3], 1 }
 0x12c   :  { %335 = vsyncpa [#allocation3 + $0x1], 1 }

</bundles_post_ra>
